<compile_context>
chip_gen: v7x
topology: tpu7x:2x2x1
jax: 0.10.0
libtpu: 0.0.40
codegen_flags: <defaults>
</compile_context>

<pallas_src>
import functools

import jax
import jax.numpy as jnp
from jax.experimental import pallas as pl
from jax.experimental.pallas import tpu as pltpu

_LANES = 128
_ROW_PACK = 32          # int8 rows pack as (32, 128) sublane tiles


def _rms_norm_quant_kernel(x_ref, w_ref, q_ref, s_ref, *, eps: float):
    # x_ref: (T, H) input dtype   w_ref: (1, H) f32
    # q_ref: (T, H) int8          s_ref: (T, 1) f32 per-token scale
    w = w_ref[...]                                     # (1, H), broadcasts over rows
    x = x_ref[...].astype(jnp.float32)                 # (T, H)

    # Per-token RMS statistics (f32 accumulation over the hidden dim).
    var = jnp.mean(x * x, axis=-1, keepdims=True)      # (T, 1)
    inv_rms = jax.lax.rsqrt(var + eps)                 # (T, 1)

    # inv_rms (positive per-row scalar) cancels out of the quantized values:
    #   rint((x*inv_rms*w) * 127 / max|x*inv_rms*w|) == rint((x*w) * 127 / max|x*w|)
    # so it only needs to be folded into the per-token scale column.
    t = x * w                                          # (T, H)
    amax = jnp.max(jnp.abs(t), axis=-1, keepdims=True)          # (T, 1)

    # Exact per-row 127/amax (tiny (T,1) column -> negligible cost). With an
    # exact divide |t * inv_scale| <= 127*(1+ulp), so rint never exceeds 127
    # and no full-tile clip is needed (wrap-around to -128 is impossible).
    inv_scale = jnp.where(amax > 0.0, 127.0 / amax, 0.0)        # guard all-zero rows

    q_ref[...] = jnp.rint(t * inv_scale).astype(jnp.int8)
    s_ref[...] = (inv_rms * amax * (1.0 / 127.0)).astype(s_ref.dtype)


def _vmem_budget():
    """Returns (vmem_limit_bytes, pipeline_budget_bytes), generation aware."""
    try:
        vmem_cap = int(pltpu.get_tpu_info().vmem_capacity_bytes)
    except Exception:
        vmem_cap = 64 << 20                  # conservative default
    if vmem_cap <= (64 << 20):
        # v7x: 64 MiB/TC physical -> 48 MiB limit (bigger tiles amortize the
        # ~0.35 us per-step overhead against 3.2 TB/s HBM; keep double buffering).
        vmem_limit = 48 << 20
    else:
        # v5e/v6e: 128 MiB physical -> 64 MiB limit.
        vmem_limit = 64 << 20
    return vmem_limit, (vmem_limit * 3) // 4


def _choose_tile_tokens(num_tokens: int, hidden: int, x_itemsize: int,
                        budget_bytes: int) -> int:
    # Per-token VMEM of one grid step: double-buffered x tile + double-buffered
    # int8 q tile + ~1 live f32 full-width temporary (elementwise pass fuses)
    # + double-buffered (T,1) scale column.
    bytes_per_token = hidden * (2 * x_itemsize + 2 * 1 + 1 * 4) + 2 * 4
    cap = max(_ROW_PACK, int(budget_bytes // bytes_per_token))
    cap = (cap // _ROW_PACK) * _ROW_PACK

    m = -(-num_tokens // _ROW_PACK)          # number of 32-row groups after min padding
    if m <= 1:
        return _ROW_PACK

    # Zero extra padding beyond round-to-32: tile = 32*d with d | m, grid = m/d >= 2.
    # Prefer an even grid (v7x dual-TC / megacore load balance), then larger tiles.
    best_key, best_tile = None, None
    for d in range(min(cap // _ROW_PACK, m), 0, -1):
        if m % d:
            continue
        g = m // d
        if g < 2:
            continue
        tile = _ROW_PACK * d
        key = (g % 2 == 0, tile)
        if best_key is None or key > best_key:
            best_key, best_tile = key, tile
    if best_tile is not None:
        return best_tile

    # Fallback (m prime and larger than cap//32): largest tile <= cap, grid >= 2.
    half = -(-m // 2) * _ROW_PACK
    return max(_ROW_PACK, min(cap, half))


def rms_norm_general(x, weight, *, eps: float = 1e-6, use_per_token_quant: bool = True,
                     tile_tokens: int | None = None):
    """Fused RMSNorm + per-token int8 quantization.

    x:      (..., hidden)  float (bf16/f32)
    weight: (hidden,)      float
    returns (q_int8 of x.shape, scales of shape (num_tokens, 1) float32)
    """
    if not use_per_token_quant:
        # TODO(synk): per-tensor quant path of awq_inference_engine.rms_norm_general
        # needs a global amax across all tokens; only the default per-token path
        # is implemented here.
        raise NotImplementedError("only use_per_token_quant=True is implemented")

    orig_shape = x.shape
    hidden = orig_shape[-1]
    assert hidden % _LANES == 0, "hidden dim must be a multiple of 128 (lane width)"

    x2d = x.reshape(-1, hidden)              # layout: [tokens, hidden]
    num_tokens = x2d.shape[0]

    vmem_limit, budget = _vmem_budget()
    if tile_tokens is None:
        tile_tokens = _choose_tile_tokens(num_tokens, hidden, x2d.dtype.itemsize, budget)
    assert tile_tokens % _ROW_PACK == 0, "tile_tokens must be a multiple of 32 (int8 packing)"

    # Pad tokens so ragged counts never assert; zero rows quantize to q=0, scale=0.
    padded_tokens = -(-num_tokens // tile_tokens) * tile_tokens
    if padded_tokens != num_tokens:
        x2d = jnp.pad(x2d, ((0, padded_tokens - num_tokens), (0, 0)))

    # Hoist the f32 cast of the (constant) weight out of the kernel body.
    w2d = weight.astype(jnp.float32).reshape(1, hidden)

    grid = (padded_tokens // tile_tokens,)
    kernel = functools.partial(_rms_norm_quant_kernel, eps=eps)

    cost = pl.CostEstimate(
        flops=6 * padded_tokens * hidden,
        transcendentals=2 * padded_tokens,
        bytes_accessed=int(padded_tokens * hidden * (x2d.dtype.itemsize + 1)
                           + padded_tokens * 4 + hidden * 4),
    )

    q2d, scales = pl.pallas_call(
        kernel,
        out_shape=(
            jax.ShapeDtypeStruct((padded_tokens, hidden), jnp.int8),
            jax.ShapeDtypeStruct((padded_tokens, 1), jnp.float32),
        ),
        grid_spec=pltpu.PrefetchScalarGridSpec(
            num_scalar_prefetch=0,
            grid=grid,
            in_specs=[
                pl.BlockSpec((tile_tokens, hidden), lambda i: (i, 0)),
                pl.BlockSpec((1, hidden), lambda i: (0, 0)),
            ],
            out_specs=[
                pl.BlockSpec((tile_tokens, hidden), lambda i: (i, 0)),
                pl.BlockSpec((tile_tokens, 1), lambda i: (i, 0)),
            ],
        ),
        compiler_params=pltpu.CompilerParams(
            dimension_semantics=("parallel",),
            vmem_limit_bytes=vmem_limit,
        ),
        cost_estimate=cost,
    )(x2d, w2d)

    if padded_tokens != num_tokens:
        q2d = q2d[:num_tokens]
        scales = scales[:num_tokens]

    q = q2d.reshape(orig_shape)
    return q, scales


def _reference(x, weight, eps):
    x32 = x.astype(jnp.float32).reshape(-1, x.shape[-1])
    w32 = weight.astype(jnp.float32)
    var = jnp.mean(x32 * x32, axis=-1, keepdims=True)
    y = x32 * jax.lax.rsqrt(var + eps) * w32[None, :]
    amax = jnp.max(jnp.abs(y), axis=-1, keepdims=True)
    scale = amax / 127.0
    inv = jnp.where(amax > 0, 127.0 / amax, 0.0)
    q = jnp.clip(jnp.rint(y * inv), -127, 127).astype(jnp.int8)
    return q.reshape(x.shape), scale


if __name__ == "__main__":
    key = jax.random.PRNGKey(0)
    k_x, k_w = jax.random.split(key)

    batch, seq, hidden = 2, 32, 128          # tokens = 64
    eps = 1e-6

    x = jax.random.normal(k_x, (batch, seq, hidden), dtype=jnp.float32)
    # Deterministic "checkpoint" weight (module __init__ takes weight of shape (hidden,)).
    weight = 1.0 + 0.05 * jax.random.normal(k_w, (hidden,), dtype=jnp.float32)

    q, scales = rms_norm_general(x, weight, eps=eps, use_per_token_quant=True)
    q = jax.block_until_ready(q)
    scales = jax.block_until_ready(scales)

    q_ref, s_ref = _reference(x, weight, eps)
    assert q.shape == x.shape and q.dtype == jnp.int8
    assert scales.shape == (batch * seq, 1) and scales.dtype == jnp.float32
    # int8 values may differ by at most 1 LSB at exact rounding boundaries
    # (f.p. reassociation of the inv_rms cancellation).
    assert int(jnp.max(jnp.abs(q.astype(jnp.int32) - q_ref.astype(jnp.int32)))) <= 1
    assert bool(jnp.allclose(scales, s_ref, rtol=1e-5, atol=1e-7))

    print("KERNEL_OK")
</pallas_src>

<mosaic_0001>
module attributes {stable_mosaic.version = 11 : i64} {
  func.func @_rms_norm_quant_kernel(%arg0: i32, %arg1: memref<32x128xf32, #tpu.memory_space<vmem>>, %arg2: memref<1x128xf32, #tpu.memory_space<vmem>>, %arg3: memref<32x128xi8, #tpu.memory_space<vmem>>, %arg4: memref<32x1xf32, #tpu.memory_space<vmem>>) attributes {dimension_semantics = [#tpu.dimension_semantics<parallel>], iteration_bounds = array<i64: 2>, scalar_prefetch = 0 : i64, scratch_operands = 0 : i64, tpu.core_type = #tpu.core_type<tc>, window_params = [{transform_indices = @transform_0, window_bounds = array<i64: 32, 128>}, {pipeline_mode = #tpu.pipeline_mode<synchronous>, transform_indices = @transform_1, window_bounds = array<i64: 1, 128>}, {transform_indices = @transform_2, window_bounds = array<i64: 32, 128>}, {transform_indices = @transform_3, window_bounds = array<i64: 32, 1>}]} {
    %c0 = arith.constant 0 : index
    %c0_0 = arith.constant 0 : index
    %0 = vector.load %arg2[%c0, %c0_0] : memref<1x128xf32, #tpu.memory_space<vmem>>, vector<1x128xf32>
    %c0_1 = arith.constant 0 : index
    %c0_2 = arith.constant 0 : index
    %1 = vector.load %arg1[%c0_1, %c0_2] : memref<32x128xf32, #tpu.memory_space<vmem>>, vector<32x128xf32>
    %2 = arith.mulf %1, %1 : vector<32x128xf32>
    %cst = arith.constant dense<0.000000e+00> : vector<32xf32>
    %3 = vector.multi_reduction <add>, %2, %cst [1] : vector<32x128xf32> to vector<32xf32>
    %4 = vector.shape_cast %3 : vector<32xf32> to vector<32x1xf32>
    %cst_3 = arith.constant 1.280000e+02 : f32
    %5 = vector.broadcast %cst_3 : f32 to vector<32x1xf32>
    %6 = arith.divf %4, %5 : vector<32x1xf32>
    %cst_4 = arith.constant 9.99999997E-7 : f32
    %7 = vector.broadcast %cst_4 : f32 to vector<32x1xf32>
    %8 = arith.addf %6, %7 : vector<32x1xf32>
    %9 = math.rsqrt %8 : vector<32x1xf32>
    %10 = vector.broadcast %0 : vector<1x128xf32> to vector<32x128xf32>
    %11 = arith.mulf %1, %10 : vector<32x128xf32>
    %12 = math.absf %11 : vector<32x128xf32>
    %cst_5 = arith.constant dense<0xFF800000> : vector<32xf32>
    %13 = vector.multi_reduction <maximumf>, %12, %cst_5 [1] : vector<32x128xf32> to vector<32xf32>
    %14 = vector.shape_cast %13 : vector<32xf32> to vector<32x1xf32>
    %cst_6 = arith.constant 0.000000e+00 : f32
    %15 = vector.broadcast %cst_6 : f32 to vector<32x1xf32>
    %16 = arith.cmpf ogt, %14, %15 : vector<32x1xf32>
    %cst_7 = arith.constant 1.270000e+02 : f32
    %17 = vector.broadcast %cst_7 : f32 to vector<32x1xf32>
    %18 = arith.divf %17, %14 : vector<32x1xf32>
    %cst_8 = arith.constant 0.000000e+00 : f32
    %19 = vector.broadcast %cst_8 : f32 to vector<32x1xf32>
    %20 = arith.select %16, %18, %19 : vector<32x1xi1>, vector<32x1xf32>
    %21 = vector.broadcast %20 : vector<32x1xf32> to vector<32x128xf32>
    %22 = arith.mulf %11, %21 : vector<32x128xf32>
    %23 = math.roundeven %22 : vector<32x128xf32>
    %24 = arith.fptosi %23 : vector<32x128xf32> to vector<32x128xi8>
    %c0_9 = arith.constant 0 : index
    %c0_10 = arith.constant 0 : index
    %25 = vector.load %arg3[%c0_9, %c0_10] : memref<32x128xi8, #tpu.memory_space<vmem>>, vector<32x128xi8>
    tpu.vector_store %arg3[%c0_9, %c0_10], %24 {strides = array<i32>} : memref<32x128xi8, #tpu.memory_space<vmem>>, vector<32x128xi8>,
    %26 = arith.mulf %9, %14 : vector<32x1xf32>
    %cst_11 = arith.constant 0.00787401571 : f32
    %27 = vector.broadcast %cst_11 : f32 to vector<32x1xf32>
    %28 = arith.mulf %26, %27 : vector<32x1xf32>
    %c0_12 = arith.constant 0 : index
    %c0_13 = arith.constant 0 : index
    %29 = vector.load %arg4[%c0_12, %c0_13] : memref<32x1xf32, #tpu.memory_space<vmem>>, vector<32x1xf32>
    tpu.vector_store %arg4[%c0_12, %c0_13], %28 {strides = array<i32>} : memref<32x1xf32, #tpu.memory_space<vmem>>, vector<32x1xf32>,
    return
  }
  func.func @transform_0(%arg0: i32) -> (i32, i32) {
    %c0_i32 = arith.constant 0 : i32
    %c0_i32_0 = arith.constant 0 : i32
    return %arg0, %c0_i32 : i32, i32
  }
  func.func @transform_1(%arg0: i32) -> (i32, i32) {
    %c0_i32 = arith.constant 0 : i32
    %c0_i32_0 = arith.constant 0 : i32
    %c0_i32_1 = arith.constant 0 : i32
    return %c0_i32, %c0_i32_0 : i32, i32
  }
  func.func @transform_2(%arg0: i32) -> (i32, i32) {
    %c0_i32 = arith.constant 0 : i32
    %c0_i32_0 = arith.constant 0 : i32
    return %arg0, %c0_i32 : i32, i32
  }
  func.func @transform_3(%arg0: i32) -> (i32, i32) {
    %c0_i32 = arith.constant 0 : i32
    %c0_i32_0 = arith.constant 0 : i32
    return %arg0, %c0_i32 : i32, i32
  }
}

</mosaic_0001>

<bundles_post_ra>
// kernel: tpu_custom_call.1
= control target key start
LH: loop header
LB: loop body
LE: loop exit
PB: predicated region body
PF: predicated region fallthrough
CT: control target
= control target key end

     0   :  { %9 = vsyncpa [#allocation3], 0  ;;  %s815_s0 = inlined_call_operand.hbm [shape: f32[64,128], index: 0, kind: input, shape index: {}]   ;;  %s816_s1 = inlined_call_operand.vmem [shape: f32[1,128], index: 1, kind: input, shape index: {}]   ;;  %s817_s2 = inlined_call_operand.hbm [shape: s8[64,128], index: 2, kind: output, shape index: {0}]   ;;  %s818_s3 = inlined_call_operand.vmem [shape: f32[64,1], index: 3, kind: output, shape index: {1}]  }
   0x1   :  { %11 = vsyncpa [#allocation3 + $0x1], 0 }
   0x2   :  { %12 = vsyncpa [#allocation4], 0 }
   0x3   :  { %14 = vsyncpa [#allocation4 + $0x1], 0  ;;  %s621_s12 = smov 0   ;;  %s623_s13 = smov 0  }
   0x4   :  { %s625_s14 = smov 0   ;;  %s627_s15 = smov 0  }
   0x5 LB: > { %s642_s16 = sadd.s32 4294967295, %s595_s15   ;;  %s418_s17 = sadd.s32 4294967294, %s595_s15   ;;  %s595_s15 = sphi %s627_s15, %s831_s15   ;;  %s591_s14 = sphi %s625_s14, %s830_s14   ;;  %s587_s13 = sphi %s623_s13, %s829_s13   ;;  %s583_s12 = sphi %s621_s12, %s828_s12  }
   0x6   : > { %s646_s18 = sadd.s32 1, %s595_s15   ;;  %s27_s19 = sadd.s32 1, %s591_s14 }
   0x7   : > { %s24_s20 = ssub.s32 %s595_s15, %s646_s18  ;;  %p34_p0 = scmp.ne.s32.totalorder %s591_s14, %s587_s13 }
   0x8   : > { %p25_p1 = scmp.eq.s32.totalorder %s24_s20, 0  ;;  %p35_p2 = scmp.eq.s32.totalorder %s595_s15, 0 }
   0x9   : > { %p40_p3 = scmp.ne.s32.totalorder %s587_s13, %s583_s12  ;;  %p41_p4 = scmp.eq.s32.totalorder %s642_s16, 0 }
   0xa   : > { %s658_s21 = scalar_select %p25_p1, %s591_s14, %s27_s19  }
   0xb   : > { %p660_p5 = por %p35_p2, %p34_p0  ;;  %p664_p6 = por %p41_p4, %p40_p3 }
   0xc   : > { %p85_p7 = scmp.eq.s32.totalorder %s642_s16, 1  ;;  %p91_p8 = scmp.eq.s32.totalorder %s418_s17, 1 }
   0xd   : > { %p447_p10 = scmp.lt.s32.totalorder %s595_s15, 2  ;;  %s140_s26 = sand.u32 1, %s591_s14  }
   0xe   : > { %p671_p11 = por %p85_p7, %p34_p0  ;;  %p675_p12 = por %p91_p8, %p40_p3 }
   0xf   : > { %s434_s27 = sshll.u32 %s595_s15, 9  ;;  %s421_s28 = sshll.u32 %s140_s26, 5 }
  0x10   : > { %s822_s24 = scalar_select %p671_p11, 1, 0 }
  0x11   : > { %s823_s25 = scalar_select %p675_p12, 1, 0 }
  0x12   : > { %s684_s4 = scalar_lea.hbm %s815_s0, %s434_s27  ;;  %s144_s5 = scalar_lea.vmem [#allocation2], %s421_s28 }
  0x13   : > { %s151_s6 = sshll.u32 %s144_s5, 4  ;;  %p688_p13 = pnand %p447_p10, %p660_p5  ;;  %s692_s6 = int_to_ptr.vmem [resolvable:$true] %s151_s6 }
  0x14   : > { %s694_s8 = scalar_lea.sflag [#allocation3], %s140_s26  ;;  %s499_s9 = scalar_lea.hbm %s684_s4, 512 }
  0x15   : > { %p500_p0 = scmp.ne.s32.totalorder %s684_s4, %s499_s9  ;;  %p501_p1 = pneg %p688_p13 }
  0x16   : > { %s504_s17 = scalar_lea.hbm %s815_s0, 1024  ;;  %p505_p4 = scmp.lt.u32.totalorder %s684_s4, %s815_s0 }
  0x17   : > { %p502_p2 = pnand %p501_p1, %p500_p0  ;;  %p506_p5 = scmp.lt.u32.totalorder %s504_s17, %s499_s9 }
  0x18   : > { %p508_p8 = scmp.lt.u32.totalorder %s499_s9, %s684_s4 }
  0x19   : > { %p503_p3 = pneg %p502_p2  ;;  %p507_p7 = por %p506_p5, %p505_p4 }
  0x1b   : > { %p509_p10 = por %p508_p8, %p507_p7 }
  0x1d   : > { %p510_p9 = pnand %p509_p10, %p503_p3 }
  0x1f   : > { %513 = shalt.err (!%p510_p9)
}
  0x20   : > { %s514_s22 = scalar_lea.vmem %s692_s6, 512  ;;  %s597_s26 = smov [#allocation2]  }
  0x21   : > { %p515_p0 = scmp.ne.s32.totalorder %s692_s6, %s514_s22  ;;  %s519_s27 = sshll.u32 %s597_s26, 4  ;;  %s520_s27 = int_to_ptr.vmem [resolvable:$false] %s519_s27 }
  0x22   : > { %s521_s28 = scalar_lea.vmem %s520_s27, 1024  ;;  %p522_p11 = scmp.lt.s32.totalorder %s692_s6, %s520_s27 }
  0x23   : > { %p517_p2 = pnand %p515_p0, %p501_p1  ;;  %p523_p4 = scmp.lt.s32.totalorder %s521_s28, %s514_s22 }
  0x25   : > { %p518_p12 = pneg %p517_p2  ;;  %p524_p5 = por %p523_p4, %p522_p11 }
  0x27   : > { %p525_p7 = pnand %p524_p5, %p518_p12 }
  0x29   : > { %528 = shalt.err (!%p525_p7)
}
  0x2a   : > { %s598_s29 = smov 128   ;;  %s599_s30 = smov 8  }
  0x2b   : > { %442 = dma.hbm_to_vmem [thread:$0]  (!%p688_p13), %s684_s4, 512, %s692_s6, %s694_s8, %s598_s29, %s598_s29, %s599_s30  }
  0x2c   : > { %p424_p9 = scmp.ge.s32.totalorder %s595_s15, 1  ;;  %p159_p1 = scmp.lt.s32.totalorder %s595_s15, 3 }
  0x2e   : > { %p160_p3 = pnand %p424_p9, %p159_p1 }
  0x2f   : > { %s725_s5 = sand.u32 (!%p160_p3), 1, %s587_s13  }
  0x30   : > { %163 = sbr.rel (%p160_p3) target bundleno = 247 (0xf7), region = 28  ;;  %s425_s9 = sshll.u32 (!%p160_p3), %s725_s5, 5 }
  0x31   : > { %s166_s10 = scalar_lea.sflag (!%p160_p3), [#allocation3], %s725_s5  ;;  %s169_s11 = scalar_lea.vmem (!%p160_p3), [#allocation2], %s425_s9 }
  0x37   : > { %574 = dma.done.wait (%p664_p6), %s166_s10, 512  }
  0x38   : > { %576 = vsyncadd (%p664_p6), %s166_s10, 4294966784  ;;  %v205_v0 = vld [vmem:[%s169_s11] sm:$0xff]  ;;  %v206_v2 = vld [vmem:[%s169_s11 + $0x8] sm:$0xff]  ;;  %s427_s23 = sshll.u32 %s642_s16, 2  ;;  %vm295_vm0 = vcmask 7168   ;;  %s426_s20 = sshll.u32 %s725_s5, 3 }
  0x39   : > { %v429_v1 = vld [vmem:[%s816_s1] ss:$0 sm:$0xff]  ;;  %v209_v3 = vmul.f32 %v205_v0, %v205_v0  ;;  %v207_v6 = vld [vmem:[%s169_s11 + $0x10] sm:$0xff]  ;;  %v208_v7 = vld [vmem:[%s169_s11 + $0x18] sm:$0xff]  ;;  %v210_v9 = vmul.f32 %v206_v2, %v206_v2  ;;  %p199_p6 = scmp.lt.s32.totalorder %s427_s23, 7  ;;  %s431_s22 = sshll.u32 %s642_s16, 7 }
  0x3a   : > { %v736_v4 = vmul.f32 %v429_v1, %v205_v0  ;;  %v738_v5 = vmul.f32 %v429_v1, %v206_v2  ;;  %v741_v10 = vmul.f32 %v429_v1, %v207_v6  ;;  %v744_v12 = vmul.f32 %v429_v1, %v208_v7  ;;  %s189_s26 = scalar_lea.vmem [#allocation5], %s426_s20  ;;  %s767_s30 = scalar_lea.hbm %s817_s2, %s431_s22 }
  0x3b   : > { %213 = vadd.xlane.f32.xlu0 %v209_v3  ;;  %v211_v15 = vmul.f32 %v207_v6, %v207_v6  ;;  %v212_v16 = vmul.f32 %v208_v7, %v208_v7  ;;  %s833_s23 = smov (!%p199_p6, %s427_s23), 7  ;;  %s319_s27 = sshll.u32 %s189_s26, 4  ;;  %s769_s27 = int_to_ptr.vmem [resolvable:$true] %s319_s27 }
  0x3c   : > { %v244_v8 = vand.u32 2147483647, %v736_v4  ;;  %v245_v11 = vand.u32 2147483647, %v738_v5  ;;  %v246_v13 = vand.u32 2147483647, %v741_v10 }
  0x3d   : > { %v247_v14 = vand.u32 2147483647, %v744_v12  ;;  %s428_s7 = sshll.u32 %s833_s23, 3  ;;  %s301_s16 = scalar_lea.sflag [#allocation4], %s725_s5 }
  0x3e   : > { %248 = vmax.xlane.f32.xlu1 %v244_v8  ;;  %s752_s19 = scalar_lea.vmem %s818_s3, %s428_s7  ;;  %s529_s9 = scalar_lea.vmem %s769_s27, 128 }
  0x3f   : > { %215 = vadd.xlane.f32.xlu0 %v210_v9  ;;  %p530_p11 = scmp.ne.s32.totalorder %s769_s27, %s529_s9  ;;  %p825_p12 = scmp.ne.s32.totalorder %s822_s24, 0 }
  0x40   : > { %s600_s10 = smov [#allocation5]  }
  0x41   : > { %p531_p13 = pnand %p530_p11, %p825_p12  ;;  %s533_s11 = sshll.u32 %s600_s10, 4  ;;  %s534_s11 = int_to_ptr.vmem [resolvable:$false] %s533_s11 }
  0x42   : > { %250 = vmax.xlane.f32.xlu1 %v245_v11  ;;  %s535_s4 = scalar_lea.vmem %s534_s11, 256  ;;  %p536_p10 = scmp.lt.s32.totalorder %s769_s27, %s534_s11 }
  0x43   : > { %252 = vmax.xlane.f32.xlu0 %v246_v13  ;;  %p532_p8 = pneg %p531_p13  ;;  %p537_p0 = scmp.lt.s32.totalorder %s535_s4, %s529_s9 }
  0x45   : > { %p538_p2 = por %p537_p0, %p536_p10 }
  0x46   : > { %254 = vmax.xlane.f32.xlu1 %v247_v14 }
  0x47   : > { %217 = vadd.xlane.f32.xlu0 %v211_v15  ;;  %p539_p4 = pnand %p538_p2, %p532_p8 }
  0x4a   : > { %219 = vadd.xlane.f32.xlu1 %v212_v16 }
  0xc8   : > { %v214_v17 = vpop.xlane.xlu0 %213 }
  0xc9   : > { %v222_v18 = vmul.f32 0.0078125, %v214_v17 }
  0xcb   : > { %v249_v19 = vpop.xlane.xlu1 %248  ;;  %v226_v20 = vadd.f32 1e-06, %v222_v18 }
  0xcc   : > { %483 = vrcp.f32 %v249_v19  ;;  %v216_v21 = vpop.xlane.xlu0 %215  ;;  %vm256_vm2 = vcmp.gt.f32.partialorder %v249_v19, 0.0 }
  0xcd   : > { %485 = vrsqrt.f32 %v226_v20  ;;  %v223_v22 = vmul.f32 0.0078125, %v216_v21 }
  0xcf   : > { %v251_v23 = vpop.xlane.xlu1 %250  ;;  %v227_v24 = vadd.f32 1e-06, %v223_v22 }
  0xd0   : > { %487 = vrcp.f32 %v251_v23  ;;  %v253_v25 = vpop.xlane.xlu0 %252  ;;  %vm257_vm1 = vcmp.gt.f32.partialorder %v251_v23, 0.0 }
  0xd1   : > { %489 = vrsqrt.f32 %v227_v24  ;;  %vm258_vm3 = vcmp.gt.f32.partialorder %v253_v25, 0.0 }
  0xd2   : > { %491 = vrcp.f32 %v253_v25 }
  0xd3   : > { %v255_v26 = vpop.xlane.xlu1 %254 }
  0xd4   : > { %493 = vrcp.f32 %v255_v26  ;;  %v218_v27 = vpop.xlane.xlu0 %217  ;;  %vm259_vm4 = vcmp.gt.f32.partialorder %v255_v26, 0.0 }
  0xd5   : > { %v224_v28 = vmul.f32 0.0078125, %v218_v27 }
  0xd6   : > { %v484_v29 = vpop.eup %483 }
  0xd7   : > { %v220_v30 = vpop.xlane.xlu1 %219  ;;  %v486_v31 = vpop.eup %485  ;;  %v228_v32 = vadd.f32 1e-06, %v224_v28  ;;  %v261_v37 = vmul.f32 127.0, %v484_v29 }
  0xd8   : > { %v225_v33 = vmul.f32 0.0078125, %v220_v30  ;;  %v287_v34 = vmul.f32 %v486_v31, %v249_v19 }
  0xd9   : > { %495 = vrsqrt.f32 %v228_v32  ;;  %v268_v46 = vsel %vm256_vm2, %v261_v37, 0.0 }
  0xda   : > { %v488_v35 = vpop.eup %487  ;;  %v229_v36 = vadd.f32 1e-06, %v225_v33  ;;  %v291_v38 = vmul.f32 0.007874016, %v287_v34  ;;  %v272_v52 = vmul.f32 %v268_v46, %v736_v4 }
  0xdb   : > { %v263_v39 = vmul.f32 127.0, %v488_v35  ;;  %v490_v40 = vpop.eup %489 }
  0xdc   : > { %497 = vrsqrt.f32 %v229_v36  ;;  %v492_v41 = vpop.eup %491  ;;  %296 = vst.msk [vmem:[%s752_s19] sm:$0xff] %vm295_vm0, %v291_v38  ;;  %v288_v43 = vmul.f32 %v490_v40, %v251_v23 }
  0xdd   : > { %v269_v42 = vsel %vm257_vm1, %v263_v39, 0.0  ;;  %v265_v45 = vmul.f32 127.0, %v492_v41 }
  0xde   : > { %v494_v44 = vpop.eup %493  ;;  %v292_v47 = vmul.f32 0.007874016, %v288_v43  ;;  %v273_v49 = vmul.f32 %v269_v42, %v738_v5 }
  0xdf   : > { %v267_v48 = vmul.f32 127.0, %v494_v44  ;;  %v270_v50 = vsel %vm258_vm3, %v265_v45, 0.0 }
  0xe0   : > { %297 = vst.msk [vmem:[%s752_s19 + $0x8] sm:$0xff] %vm295_vm0, %v292_v47  ;;  %v274_v53 = vmul.f32 %v270_v50, %v741_v10  ;;  %v276_v56 = vpack.c.f32.eXmY %v272_v52, %v273_v49, 312 }
  0xe1   : > { %v271_v51 = vsel %vm259_vm4, %v267_v48, 0.0 }
  0xe2   : > { %v275_v54 = vmul.f32 %v271_v51, %v744_v12 }
  0xe3   : > { %v496_v55 = vpop.eup %495 }
  0xe4   : > { %v280_v57 = vpack.c.f32.eXmY %v274_v53, %v275_v54, 312  ;;  %v289_v58 = vmul.f32 %v496_v55, %v253_v25 }
  0xe6   : > { %v498_v59 = vpop.eup %497  ;;  %v284_v60 = vpack.c.b8 %v280_v57, %v276_v56  ;;  %v293_v61 = vmul.f32 0.007874016, %v289_v58 }
  0xe7   : > { %v290_v62 = vmul.f32 %v498_v59, %v255_v26 }
  0xe8   : > { %286 = vst [vmem:[%s189_s26] sm:$0xff] %v284_v60  ;;  %298 = vst.msk [vmem:[%s752_s19 + $0x10] sm:$0xff] %vm295_vm0, %v293_v61 }
  0xe9   : > { %v294_v63 = vmul.f32 0.007874016, %v290_v62 }
  0xea   : > { %542 = shalt.err (!%p539_p4)
}
  0xeb   : > { %s543_s5 = scalar_lea.hbm %s767_s30, 128  ;;  %s547_s7 = scalar_lea.hbm %s817_s2, 256 }
  0xec   : > { %p544_p5 = scmp.ne.s32.totalorder %s767_s30, %s543_s5  ;;  %p548_p1 = scmp.lt.u32.totalorder %s767_s30, %s817_s2 }
  0xed   : > { %p549_p3 = scmp.lt.u32.totalorder %s547_s7, %s543_s5  ;;  %p551_p11 = scmp.lt.u32.totalorder %s543_s5, %s767_s30 }
  0xee   : > { %p545_p7 = pnand %p544_p5, %p825_p12 }
  0xef   : > { %p550_p6 = por %p549_p3, %p548_p1 }
  0xf0   : > { %p546_p9 = pneg %p545_p7 }
  0xf1   : > { %p552_p13 = por %p551_p11, %p550_p6 }
  0xf3   : > { %p553_p8 = pnand %p552_p13, %p546_p9 }
  0xf5   : > { %556 = shalt.err (!%p553_p8)
}
  0xf6   : > { %437 = dma.vmem_to_hbm [thread:$0]  (%p825_p12), %s769_s27, 128, %s767_s30, %s301_s16   ;;  %299 = vst.msk [vmem:[%s752_s19 + $0x18] sm:$0xff] %vm295_vm0, %v294_v63 }
  0xf7 PF: > { %s335_s20 = sand.u32 1, %s583_s12   ;;  %p826_p10 = scmp.ne.s32.totalorder %s823_s25, 0 }
  0xf8   : > { %p827_p0 = scmp.ge.s32.totalorder %s595_s15, 2  ;;  %s336_s22 = scalar_lea.sflag [#allocation4], %s335_s20 }
  0xfa   : > { %p444_p2 = pnand %p827_p0, %p826_p10 }
  0xfc   : > { %578 = dma.done.wait (!%p444_p2), %s336_s22, 128  }
  0xfd   : > { %580 = vsyncadd (!%p444_p2), %s336_s22, 4294967168  ;;  %p17_p4 = scmp.ge.s32.totalorder %s646_s18, 4   ;;  %s828_s12 = smov %s587_s13 }
  0xfe   : > { %s829_s13 = smov %s591_s14  ;;  %s830_s14 = smov %s658_s21 }
  0xff   : > { %s831_s15 = smov %s646_s18  ;;  %19 = sbr.rel (!%p17_p4) target bundleno = 5 (0x5), region = 85 }
 0x106   :  { %349 = vsyncpa [#allocation3], 1 }
 0x107   :  { %351 = vsyncpa [#allocation3 + $0x1], 1 }
 0x108   :  { %352 = vsyncpa [#allocation4], 1 }
 0x109   :  { %354 = vsyncpa [#allocation4 + $0x1], 1 }

</bundles_post_ra>
